<compile_context>
chip_gen: v7x
topology: tpu7x:2x2x1
jax: 0.10.0
libtpu: 0.0.40
codegen_flags: <defaults>
</compile_context>

<pallas_src>
import math
import functools

import jax
import jax.numpy as jnp
from jax.experimental import pallas as pl
from jax.experimental.pallas import tpu as pltpu

_LANE = 128
_SUBLANE = 8


# ---------------------------------------------------------------------------
# In-kernel pieces
# ---------------------------------------------------------------------------
def _softmax_lastdim(s):
    """Numerically-stable softmax over the last axis, f32 VPU/EUP work."""
    m = jnp.max(s, axis=-1, keepdims=True)
    e = jnp.exp(s - m)
    # approx reciprocal executes on the EUP slot (nearly free next to VPU work)
    return e * pl.reciprocal(jnp.sum(e, axis=-1, keepdims=True), approx=True)


def _attention_core(Q, K, V, wo_ref, bo_ref, out_ref, ctx_ref, *,
                    bb, S, nh, dk, mm_dtype):
    """Per-head attention; contexts go to a VMEM scratch, then one K=H matmul.

    Q/K/V:   (bb*S, H) f32 activations (1/sqrt(d_k) already folded into Q).
    wo_ref:  (H, Hp)   pre-transposed, lane-padded, matmul-dtype output weight.
    bo_ref:  (1, Hp)   f32 (padded) output bias.
    out_ref: (bb*S, Hp) lane-dense output block.
    ctx_ref: (bb*S, H)  VMEM scratch holding the concatenated head contexts.
    """
    rows = bb * S
    for h in range(nh):                      # static unroll; nh is small
        lo = h * dk
        Qh = Q[:, lo:lo + dk].astype(mm_dtype).reshape(bb, S, dk)
        Kh = K[:, lo:lo + dk].astype(mm_dtype).reshape(bb, S, dk)
        Vh = V[:, lo:lo + dk].astype(mm_dtype).reshape(bb, S, dk)
        # Batched over the batch-block dim; contraction on d_k (no explicit
        # K^T / XLU transpose).
        s = jnp.einsum("bqd,bkd->bqk", Qh, Kh,
                       preferred_element_type=jnp.float32)        # (bb, S, S)
        p = _softmax_lastdim(s)                                    # f32
        ctx = jnp.einsum("bqk,bkd->bqd", p.astype(mm_dtype), Vh,
                         preferred_element_type=jnp.float32)       # (bb, S, dk)
        # Write into the VMEM scratch (short live range) instead of carrying a
        # wide accumulator across the unrolled head loop.
        ctx_ref[:, lo:lo + dk] = ctx.reshape(rows, dk).astype(ctx_ref.dtype)

    # Single output projection with full contraction depth K = H (replaces the
    # previous nh matmuls with K = d_k that under-fed the MXU), fused bias add.
    acc = jnp.dot(ctx_ref[...], wo_ref[...], preferred_element_type=jnp.float32)
    out_ref[...] = (acc + bo_ref[...]).astype(out_ref.dtype)


def _mha_self_kernel(x_ref, wqkv_ref, wo_ref, bo_ref, out_ref, ctx_ref, *,
                     bb, S, H, nh, dk, mm_dtype):
    """Self-attention path: one fused (rows, H) @ (H, 3H) projection."""
    x = x_ref[...].astype(mm_dtype)
    proj = jnp.dot(x, wqkv_ref[...], preferred_element_type=jnp.float32)
    _attention_core(proj[:, 0:H], proj[:, H:2 * H], proj[:, 2 * H:3 * H],
                    wo_ref, bo_ref, out_ref, ctx_ref,
                    bb=bb, S=S, nh=nh, dk=dk, mm_dtype=mm_dtype)


def _mha_kernel(q_ref, k_ref, v_ref, wq_ref, wk_ref, wv_ref, wo_ref, bo_ref,
                out_ref, ctx_ref, *, bb, S, nh, dk, mm_dtype):
    """General path: distinct query/key/value inputs."""
    Q = jnp.dot(q_ref[...].astype(mm_dtype), wq_ref[...],
                preferred_element_type=jnp.float32)
    K = jnp.dot(k_ref[...].astype(mm_dtype), wk_ref[...],
                preferred_element_type=jnp.float32)
    V = jnp.dot(v_ref[...].astype(mm_dtype), wv_ref[...],
                preferred_element_type=jnp.float32)
    _attention_core(Q, K, V, wo_ref, bo_ref, out_ref, ctx_ref,
                    bb=bb, S=S, nh=nh, dk=dk, mm_dtype=mm_dtype)


# ---------------------------------------------------------------------------
# Host-side helpers
# ---------------------------------------------------------------------------
def prepare_mha_params(params, *, num_heads, matmul_dtype=jnp.float32):
    """One-time weight preprocessing (hoisted out of the per-forward path).

    Pre-transposes Wq/Wk/Wv/Wo, folds 1/sqrt(d_k) into Wq, concatenates the
    fused QKV weight, lane-pads the output linear (skipped when H % 128 == 0),
    and casts matmul operands to `matmul_dtype` on the host.
    """
    f32 = jnp.float32
    Wq = params["Wq"].astype(f32)
    Wk = params["Wk"].astype(f32)
    Wv = params["Wv"].astype(f32)
    Wo = params["Wo"].astype(f32)
    bo = params["bo"].astype(f32)

    H = Wq.shape[0]
    assert H % num_heads == 0
    dk = H // num_heads
    scale = 1.0 / math.sqrt(dk)
    Hp = H if H % _LANE == 0 else ((H + _LANE - 1) // _LANE) * _LANE

    wq_t = (Wq.T * scale).astype(matmul_dtype)     # (H, H), scale folded in
    wk_t = Wk.T.astype(matmul_dtype)
    wv_t = Wv.T.astype(matmul_dtype)
    wqkv_t = jnp.concatenate([wq_t, wk_t, wv_t], axis=1)   # (H, 3H)

    wo_t = Wo.T
    if Hp != H:
        wo_t = jnp.zeros((H, Hp), f32).at[:, :H].set(wo_t)
        bo_row = jnp.zeros((1, Hp), f32).at[0, :H].set(bo)
    else:
        bo_row = bo.reshape(1, H)
    wo_t = wo_t.astype(matmul_dtype)

    return {
        "wqkv_t": wqkv_t, "wq_t": wq_t, "wk_t": wk_t, "wv_t": wv_t,
        "wo_t": wo_t, "bo": bo_row,
        "H": int(H), "Hp": int(Hp), "num_heads": int(num_heads),
        "d_k": int(dk), "matmul_dtype": matmul_dtype,
    }


def _pick_batch_blocks(B, S):
    """Largest G dividing B with sublane-aligned per-block rows (prefer G=B)."""
    for G in range(B, 0, -1):
        if B % G == 0 and ((B // G) * S) % _SUBLANE == 0:
            return G
    return 1   # single block == full array, always layout-legal


def _vmem_budget_bytes(rb, H, Hp, S, bb, mm_bytes, n_act):
    """Rough per-grid-step VMEM estimate -> explicit scoped-VMEM limit."""
    f32 = 4
    weights = 3 * H * H * mm_bytes + H * Hp * mm_bytes + Hp * f32
    acts = 2 * n_act * rb * H * f32          # double-buffered activation blocks
    outs = 2 * rb * Hp * f32                 # double-buffered output blocks
    scratch = rb * H * mm_bytes              # ctx scratch
    live = rb * 3 * H * f32 + 3 * bb * S * S * f32 + 2 * rb * Hp * f32
    est = weights + acts + outs + scratch + live
    # Clamp to [32 MiB, 64 MiB]: above v5e's 16 MiB scoped default, within
    # v7x's 64 MiB physical VMEM.
    return int(min(max(2 * est, 32 << 20), 64 << 20))


def multi_headed_attention(query, key, value, params, *, num_heads=None,
                           num_batch_blocks=None, matmul_dtype=jnp.float32,
                           qkv_fused=None):
    """GBert MultiHeadedAttention forward (mask=None, eval).

    query/key/value: [B, S, H] arrays.
    params: either raw {"Wq","Wk","Wv","Wo","bo"} (prepped on the fly) or the
      dict returned by prepare_mha_params() (preferred: prep once, reuse).
    num_batch_blocks: grid size over the batch.  Default: one batch element per
      grid step (megacore-parallel on v7x, pipelined activation DMA, VMEM-safe
      at real GBERT sizes).
    matmul_dtype: dtype of MXU matmul operands (f32 accumulation kept).
      bfloat16 recommended on v5e/v6e/v7x at real GBERT sizes.
    qkv_fused: force/disable the fused-QKV self-attention path; default is an
      object-identity check (query is key is value), which is how GBert's
      TransformerBlock calls this module.
    """
    if "Wq" in params:
        assert num_heads is not None, "num_heads required with raw params"
        params = prepare_mha_params(params, num_heads=num_heads,
                                    matmul_dtype=matmul_dtype)

    H, Hp = params["H"], params["Hp"]
    nh, dk = params["num_heads"], params["d_k"]
    mm_dtype = params["matmul_dtype"]
    mm_bytes = jnp.dtype(mm_dtype).itemsize

    B, S, Hx = query.shape
    assert Hx == H, "hidden size mismatch between inputs and params"

    if num_batch_blocks is None:
        G = _pick_batch_blocks(B, S)
    else:
        G = int(num_batch_blocks)
    assert B % G == 0, "num_batch_blocks must divide the batch size"
    bb = B // G
    assert G == 1 or (bb * S) % _SUBLANE == 0, \
        "per-block rows must be sublane aligned"

    rows = B * S
    rb = bb * S

    if qkv_fused is None:
        qkv_fused = (query is key) and (key is value)
    n_act = 1 if qkv_fused else 3

    x_spec = pl.BlockSpec((rb, H), lambda g: (g, 0))
    out_spec = pl.BlockSpec((rb, Hp), lambda g: (g, 0))

    def wspec(shape):   # constant index_map -> weights stay resident in VMEM
        return pl.BlockSpec(shape, lambda g: (0, 0))

    cp = pltpu.CompilerParams(
        dimension_semantics=("parallel",),
        vmem_limit_bytes=_vmem_budget_bytes(rb, H, Hp, S, bb, mm_bytes, n_act))
    out_shape = jax.ShapeDtypeStruct((rows, Hp), query.dtype)
    scratch = [pltpu.VMEM((rb, H), mm_dtype)]
    common = dict(bb=bb, S=S, nh=nh, dk=dk, mm_dtype=mm_dtype)

    if qkv_fused:
        kernel = functools.partial(_mha_self_kernel, H=H, **common)
        out2d = pl.pallas_call(
            kernel,
            out_shape=out_shape,
            grid=(G,),
            in_specs=[x_spec, wspec((H, 3 * H)), wspec((H, Hp)), wspec((1, Hp))],
            out_specs=out_spec,
            scratch_shapes=scratch,
            compiler_params=cp,
        )(query.reshape(rows, H), params["wqkv_t"], params["wo_t"], params["bo"])
    else:
        kernel = functools.partial(_mha_kernel, **common)
        out2d = pl.pallas_call(
            kernel,
            out_shape=out_shape,
            grid=(G,),
            in_specs=[x_spec, x_spec, x_spec,
                      wspec((H, H)), wspec((H, H)), wspec((H, H)),
                      wspec((H, Hp)), wspec((1, Hp))],
            out_specs=out_spec,
            scratch_shapes=scratch,
            compiler_params=cp,
        )(query.reshape(rows, H), key.reshape(rows, H), value.reshape(rows, H),
          params["wq_t"], params["wk_t"], params["wv_t"],
          params["wo_t"], params["bo"])

    out2d = out2d if Hp == H else out2d[:, :H]   # no-op when H % 128 == 0
    return out2d.reshape(B, S, H)


# ---------------------------------------------------------------------------
# Pure-JAX reference and self-test
# ---------------------------------------------------------------------------
def _reference(query, key, value, params, *, num_heads):
    """Pure-JAX reference mirroring the PyTorch forward (mask=None, eval)."""
    B, S, H = query.shape
    d_k = H // num_heads
    proj = lambda x, w: x @ w.T

    def split_heads(x):  # (B,S,H) -> (B,h,S,d_k)
        return x.reshape(B, S, num_heads, d_k).transpose(0, 2, 1, 3)

    Q = split_heads(proj(query, params["Wq"]))
    K = split_heads(proj(key, params["Wk"]))
    V = split_heads(proj(value, params["Wv"]))
    scores = jnp.einsum("bhqd,bhkd->bhqk", Q, K) / math.sqrt(d_k)
    p = jax.nn.softmax(scores, axis=-1)
    ctx = jnp.einsum("bhqk,bhkd->bhqd", p, V)
    ctx = ctx.transpose(0, 2, 1, 3).reshape(B, S, H)
    return ctx @ params["Wo"].T + params["bo"]


if __name__ == "__main__":
    # Small BertConfig-consistent shapes: hidden=32, heads=4 (d_k=8), B=2, S=8.
    B, S, H, NUM_HEADS = 2, 8, 32, 4

    key0 = jax.random.PRNGKey(0)
    kx, kq, kk, kv, kwq, kwk, kwv, kwo, kbo = jax.random.split(key0, 9)

    x = jax.random.normal(kx, (B, S, H), dtype=jnp.float32)
    query = jax.random.normal(kq, (B, S, H), dtype=jnp.float32)
    key_in = jax.random.normal(kk, (B, S, H), dtype=jnp.float32)
    value = jax.random.normal(kv, (B, S, H), dtype=jnp.float32)

    init = 0.02  # BertConfig initializer_range-style scale
    params = {
        "Wq": init * jax.random.normal(kwq, (H, H), dtype=jnp.float32),
        "Wk": init * jax.random.normal(kwk, (H, H), dtype=jnp.float32),
        "Wv": init * jax.random.normal(kwv, (H, H), dtype=jnp.float32),
        "Wo": init * jax.random.normal(kwo, (H, H), dtype=jnp.float32),
        "bo": init * jax.random.normal(kbo, (H,), dtype=jnp.float32),
    }

    TOL = dict(atol=1e-3, rtol=1e-3)  # headroom for the EUP approx reciprocal

    # One-time weight preprocessing (hoisted out of the per-forward path).
    prepped = prepare_mha_params(params, num_heads=NUM_HEADS,
                                 matmul_dtype=jnp.float32)

    # 1) Self-attention (how GBert's TransformerBlock calls this module):
    #    fused QKV projection, default per-batch-element grid (G = B = 2).
    out_self = jax.block_until_ready(multi_headed_attention(x, x, x, prepped))
    ref_self = _reference(x, x, x, params, num_heads=NUM_HEADS)
    assert out_self.shape == (B, S, H)
    assert jnp.allclose(out_self, ref_self, **TOL), "self-attention mismatch"

    # 2) General path with distinct query/key/value (raw params -> on-the-fly prep).
    out_x = jax.block_until_ready(
        multi_headed_attention(query, key_in, value, params,
                               num_heads=NUM_HEADS))
    ref_x = _reference(query, key_in, value, params, num_heads=NUM_HEADS)
    assert jnp.allclose(out_x, ref_x, **TOL), "cross-attention mismatch"

    # 3) Explicit 2-way batch grid (one block per v7x TensorCore).
    out_p = jax.block_until_ready(
        multi_headed_attention(x, x, x, prepped, num_batch_blocks=2))
    assert jnp.allclose(out_p, ref_self, **TOL), "parallel-grid mismatch"

    # 4) Single-block fallback still works (G=1, block == full array).
    out_1 = jax.block_until_ready(
        multi_headed_attention(x, x, x, prepped, num_batch_blocks=1))
    assert jnp.allclose(out_1, ref_self, **TOL), "single-block mismatch"

    print("KERNEL_OK")
</pallas_src>

<mosaic_0001>
module attributes {stable_mosaic.version = 11 : i64} {
  func.func @_mha_self_kernel(%arg0: i32, %arg1: memref<8x32xf32, #tpu.memory_space<vmem>>, %arg2: memref<32x96xf32, #tpu.memory_space<vmem>>, %arg3: memref<32x128xf32, #tpu.memory_space<vmem>>, %arg4: memref<1x128xf32, #tpu.memory_space<vmem>>, %arg5: memref<8x128xf32, #tpu.memory_space<vmem>>, %arg6: memref<8x32xf32, #tpu.memory_space<vmem>>) attributes {dimension_semantics = [#tpu.dimension_semantics<parallel>], iteration_bounds = array<i64: 2>, scalar_prefetch = 0 : i64, scratch_operands = 1 : i64, tpu.core_type = #tpu.core_type<tc>, window_params = [{transform_indices = @transform_0, window_bounds = array<i64: 8, 32>}, {pipeline_mode = #tpu.pipeline_mode<synchronous>, transform_indices = @transform_1, window_bounds = array<i64: 32, 96>}, {pipeline_mode = #tpu.pipeline_mode<synchronous>, transform_indices = @transform_2, window_bounds = array<i64: 32, 128>}, {pipeline_mode = #tpu.pipeline_mode<synchronous>, transform_indices = @transform_3, window_bounds = array<i64: 1, 128>}, {transform_indices = @transform_4, window_bounds = array<i64: 8, 128>}]} {
    %c0 = arith.constant 0 : index
    %c0_0 = arith.constant 0 : index
    %0 = vector.load %arg1[%c0, %c0_0] : memref<8x32xf32, #tpu.memory_space<vmem>>, vector<8x32xf32>
    %c0_1 = arith.constant 0 : index
    %c0_2 = arith.constant 0 : index
    %1 = vector.load %arg2[%c0_1, %c0_2] : memref<32x96xf32, #tpu.memory_space<vmem>>, vector<32x96xf32>
    %cst = arith.constant dense<0.000000e+00> : vector<8x96xf32>
    %2 = tpu.matmul %0, %1, %cst {dimension_numbers = #tpu.dot_dimension_numbers<[1], [0], [0], [1], [0, 0, 1, 1], [], []>} : vector<8x32xf32>, vector<32x96xf32>, vector<8x96xf32> -> vector<8x96xf32>
    %3 = vector.extract_strided_slice %2 {offsets = [0, 0], sizes = [8, 32], strides = [1, 1]} : vector<8x96xf32> to vector<8x32xf32>
    %4 = vector.extract_strided_slice %2 {offsets = [0, 32], sizes = [8, 32], strides = [1, 1]} : vector<8x96xf32> to vector<8x32xf32>
    %5 = vector.extract_strided_slice %2 {offsets = [0, 64], sizes = [8, 32], strides = [1, 1]} : vector<8x96xf32> to vector<8x32xf32>
    %6 = vector.extract_strided_slice %3 {offsets = [0, 0], sizes = [8, 8], strides = [1, 1]} : vector<8x32xf32> to vector<8x8xf32>
    %7 = vector.shape_cast %6 : vector<8x8xf32> to vector<1x8x8xf32>
    %8 = vector.extract_strided_slice %4 {offsets = [0, 0], sizes = [8, 8], strides = [1, 1]} : vector<8x32xf32> to vector<8x8xf32>
    %9 = vector.shape_cast %8 : vector<8x8xf32> to vector<1x8x8xf32>
    %10 = vector.extract_strided_slice %5 {offsets = [0, 0], sizes = [8, 8], strides = [1, 1]} : vector<8x32xf32> to vector<8x8xf32>
    %11 = vector.shape_cast %10 : vector<8x8xf32> to vector<1x8x8xf32>
    "tpu.trace_start"() <{level = 10 : i32, message = "bqd,bkd->bqk"}> : () -> ()
    %cst_3 = arith.constant dense<0.000000e+00> : vector<1x8x8xf32>
    %12 = tpu.matmul %7, %9, %cst_3 {dimension_numbers = #tpu.dot_dimension_numbers<[2], [2], [1], [1], [0, 0, 0, 1, 1, 1], [0], [0]>} : vector<1x8x8xf32>, vector<1x8x8xf32>, vector<1x8x8xf32> -> vector<1x8x8xf32>
    "tpu.trace_stop"() : () -> ()
    %cst_4 = arith.constant dense<0xFF800000> : vector<1x8xf32>
    %13 = vector.multi_reduction <maximumf>, %12, %cst_4 [2] : vector<1x8x8xf32> to vector<1x8xf32>
    %14 = vector.shape_cast %13 : vector<1x8xf32> to vector<1x8x1xf32>
    %15 = vector.broadcast %14 : vector<1x8x1xf32> to vector<1x8x8xf32>
    %16 = arith.subf %12, %15 : vector<1x8x8xf32>
    %17 = math.exp %16 : vector<1x8x8xf32>
    %cst_5 = arith.constant dense<0.000000e+00> : vector<1x8xf32>
    %18 = vector.multi_reduction <add>, %17, %cst_5 [2] : vector<1x8x8xf32> to vector<1x8xf32>
    %19 = vector.shape_cast %18 : vector<1x8xf32> to vector<1x8x1xf32>
    %20 = tpu.reciprocal %19 {approx = true} : vector<1x8x1xf32> -> vector<1x8x1xf32>
    %21 = vector.broadcast %20 : vector<1x8x1xf32> to vector<1x8x8xf32>
    %22 = arith.mulf %17, %21 : vector<1x8x8xf32>
    "tpu.trace_start"() <{level = 10 : i32, message = "bqk,bkd->bqd"}> : () -> ()
    %cst_6 = arith.constant dense<0.000000e+00> : vector<1x8x8xf32>
    %23 = tpu.matmul %22, %11, %cst_6 {dimension_numbers = #tpu.dot_dimension_numbers<[2], [1], [1], [2], [0, 0, 0, 1, 1, 2], [0], [0]>} : vector<1x8x8xf32>, vector<1x8x8xf32>, vector<1x8x8xf32> -> vector<1x8x8xf32>
    "tpu.trace_stop"() : () -> ()
    %24 = vector.shape_cast %23 : vector<1x8x8xf32> to vector<8x8xf32>
    %c0_7 = arith.constant 0 : index
    %c0_8 = arith.constant 0 : index
    %25 = vector.load %arg6[%c0_7, %c0_8] : memref<8x32xf32, #tpu.memory_space<vmem>>, vector<8x8xf32>
    tpu.vector_store %arg6[%c0_7, %c0_8], %24 {strides = array<i32>} : memref<8x32xf32, #tpu.memory_space<vmem>>, vector<8x8xf32>,
    %26 = vector.extract_strided_slice %3 {offsets = [0, 8], sizes = [8, 8], strides = [1, 1]} : vector<8x32xf32> to vector<8x8xf32>
    %27 = vector.shape_cast %26 : vector<8x8xf32> to vector<1x8x8xf32>
    %28 = vector.extract_strided_slice %4 {offsets = [0, 8], sizes = [8, 8], strides = [1, 1]} : vector<8x32xf32> to vector<8x8xf32>
    %29 = vector.shape_cast %28 : vector<8x8xf32> to vector<1x8x8xf32>
    %30 = vector.extract_strided_slice %5 {offsets = [0, 8], sizes = [8, 8], strides = [1, 1]} : vector<8x32xf32> to vector<8x8xf32>
    %31 = vector.shape_cast %30 : vector<8x8xf32> to vector<1x8x8xf32>
    "tpu.trace_start"() <{level = 10 : i32, message = "bqd,bkd->bqk"}> : () -> ()
    %cst_9 = arith.constant dense<0.000000e+00> : vector<1x8x8xf32>
    %32 = tpu.matmul %27, %29, %cst_9 {dimension_numbers = #tpu.dot_dimension_numbers<[2], [2], [1], [1], [0, 0, 0, 1, 1, 1], [0], [0]>} : vector<1x8x8xf32>, vector<1x8x8xf32>, vector<1x8x8xf32> -> vector<1x8x8xf32>
    "tpu.trace_stop"() : () -> ()
    %cst_10 = arith.constant dense<0xFF800000> : vector<1x8xf32>
    %33 = vector.multi_reduction <maximumf>, %32, %cst_10 [2] : vector<1x8x8xf32> to vector<1x8xf32>
    %34 = vector.shape_cast %33 : vector<1x8xf32> to vector<1x8x1xf32>
    %35 = vector.broadcast %34 : vector<1x8x1xf32> to vector<1x8x8xf32>
    %36 = arith.subf %32, %35 : vector<1x8x8xf32>
    %37 = math.exp %36 : vector<1x8x8xf32>
    %cst_11 = arith.constant dense<0.000000e+00> : vector<1x8xf32>
    %38 = vector.multi_reduction <add>, %37, %cst_11 [2] : vector<1x8x8xf32> to vector<1x8xf32>
    %39 = vector.shape_cast %38 : vector<1x8xf32> to vector<1x8x1xf32>
    %40 = tpu.reciprocal %39 {approx = true} : vector<1x8x1xf32> -> vector<1x8x1xf32>
    %41 = vector.broadcast %40 : vector<1x8x1xf32> to vector<1x8x8xf32>
    %42 = arith.mulf %37, %41 : vector<1x8x8xf32>
    "tpu.trace_start"() <{level = 10 : i32, message = "bqk,bkd->bqd"}> : () -> ()
    %cst_12 = arith.constant dense<0.000000e+00> : vector<1x8x8xf32>
    %43 = tpu.matmul %42, %31, %cst_12 {dimension_numbers = #tpu.dot_dimension_numbers<[2], [1], [1], [2], [0, 0, 0, 1, 1, 2], [0], [0]>} : vector<1x8x8xf32>, vector<1x8x8xf32>, vector<1x8x8xf32> -> vector<1x8x8xf32>
    "tpu.trace_stop"() : () -> ()
    %44 = vector.shape_cast %43 : vector<1x8x8xf32> to vector<8x8xf32>
    %c0_13 = arith.constant 0 : index
    %c8 = arith.constant 8 : index
    %45 = vector.load %arg6[%c0_13, %c8] : memref<8x32xf32, #tpu.memory_space<vmem>>, vector<8x8xf32>
    tpu.vector_store %arg6[%c0_13, %c8], %44 {strides = array<i32>} : memref<8x32xf32, #tpu.memory_space<vmem>>, vector<8x8xf32>,
    %46 = vector.extract_strided_slice %3 {offsets = [0, 16], sizes = [8, 8], strides = [1, 1]} : vector<8x32xf32> to vector<8x8xf32>
    %47 = vector.shape_cast %46 : vector<8x8xf32> to vector<1x8x8xf32>
    %48 = vector.extract_strided_slice %4 {offsets = [0, 16], sizes = [8, 8], strides = [1, 1]} : vector<8x32xf32> to vector<8x8xf32>
    %49 = vector.shape_cast %48 : vector<8x8xf32> to vector<1x8x8xf32>
    %50 = vector.extract_strided_slice %5 {offsets = [0, 16], sizes = [8, 8], strides = [1, 1]} : vector<8x32xf32> to vector<8x8xf32>
    %51 = vector.shape_cast %50 : vector<8x8xf32> to vector<1x8x8xf32>
    "tpu.trace_start"() <{level = 10 : i32, message = "bqd,bkd->bqk"}> : () -> ()
    %cst_14 = arith.constant dense<0.000000e+00> : vector<1x8x8xf32>
    %52 = tpu.matmul %47, %49, %cst_14 {dimension_numbers = #tpu.dot_dimension_numbers<[2], [2], [1], [1], [0, 0, 0, 1, 1, 1], [0], [0]>} : vector<1x8x8xf32>, vector<1x8x8xf32>, vector<1x8x8xf32> -> vector<1x8x8xf32>
    "tpu.trace_stop"() : () -> ()
    %cst_15 = arith.constant dense<0xFF800000> : vector<1x8xf32>
    %53 = vector.multi_reduction <maximumf>, %52, %cst_15 [2] : vector<1x8x8xf32> to vector<1x8xf32>
    %54 = vector.shape_cast %53 : vector<1x8xf32> to vector<1x8x1xf32>
    %55 = vector.broadcast %54 : vector<1x8x1xf32> to vector<1x8x8xf32>
    %56 = arith.subf %52, %55 : vector<1x8x8xf32>
    %57 = math.exp %56 : vector<1x8x8xf32>
    %cst_16 = arith.constant dense<0.000000e+00> : vector<1x8xf32>
    %58 = vector.multi_reduction <add>, %57, %cst_16 [2] : vector<1x8x8xf32> to vector<1x8xf32>
    %59 = vector.shape_cast %58 : vector<1x8xf32> to vector<1x8x1xf32>
    %60 = tpu.reciprocal %59 {approx = true} : vector<1x8x1xf32> -> vector<1x8x1xf32>
    %61 = vector.broadcast %60 : vector<1x8x1xf32> to vector<1x8x8xf32>
    %62 = arith.mulf %57, %61 : vector<1x8x8xf32>
    "tpu.trace_start"() <{level = 10 : i32, message = "bqk,bkd->bqd"}> : () -> ()
    %cst_17 = arith.constant dense<0.000000e+00> : vector<1x8x8xf32>
    %63 = tpu.matmul %62, %51, %cst_17 {dimension_numbers = #tpu.dot_dimension_numbers<[2], [1], [1], [2], [0, 0, 0, 1, 1, 2], [0], [0]>} : vector<1x8x8xf32>, vector<1x8x8xf32>, vector<1x8x8xf32> -> vector<1x8x8xf32>
    "tpu.trace_stop"() : () -> ()
    %64 = vector.shape_cast %63 : vector<1x8x8xf32> to vector<8x8xf32>
    %c0_18 = arith.constant 0 : index
    %c16 = arith.constant 16 : index
    %65 = vector.load %arg6[%c0_18, %c16] : memref<8x32xf32, #tpu.memory_space<vmem>>, vector<8x8xf32>
    tpu.vector_store %arg6[%c0_18, %c16], %64 {strides = array<i32>} : memref<8x32xf32, #tpu.memory_space<vmem>>, vector<8x8xf32>,
    %66 = vector.extract_strided_slice %3 {offsets = [0, 24], sizes = [8, 8], strides = [1, 1]} : vector<8x32xf32> to vector<8x8xf32>
    %67 = vector.shape_cast %66 : vector<8x8xf32> to vector<1x8x8xf32>
    %68 = vector.extract_strided_slice %4 {offsets = [0, 24], sizes = [8, 8], strides = [1, 1]} : vector<8x32xf32> to vector<8x8xf32>
    %69 = vector.shape_cast %68 : vector<8x8xf32> to vector<1x8x8xf32>
    %70 = vector.extract_strided_slice %5 {offsets = [0, 24], sizes = [8, 8], strides = [1, 1]} : vector<8x32xf32> to vector<8x8xf32>
    %71 = vector.shape_cast %70 : vector<8x8xf32> to vector<1x8x8xf32>
    "tpu.trace_start"() <{level = 10 : i32, message = "bqd,bkd->bqk"}> : () -> ()
    %cst_19 = arith.constant dense<0.000000e+00> : vector<1x8x8xf32>
    %72 = tpu.matmul %67, %69, %cst_19 {dimension_numbers = #tpu.dot_dimension_numbers<[2], [2], [1], [1], [0, 0, 0, 1, 1, 1], [0], [0]>} : vector<1x8x8xf32>, vector<1x8x8xf32>, vector<1x8x8xf32> -> vector<1x8x8xf32>
    "tpu.trace_stop"() : () -> ()
    %cst_20 = arith.constant dense<0xFF800000> : vector<1x8xf32>
    %73 = vector.multi_reduction <maximumf>, %72, %cst_20 [2] : vector<1x8x8xf32> to vector<1x8xf32>
    %74 = vector.shape_cast %73 : vector<1x8xf32> to vector<1x8x1xf32>
    %75 = vector.broadcast %74 : vector<1x8x1xf32> to vector<1x8x8xf32>
    %76 = arith.subf %72, %75 : vector<1x8x8xf32>
    %77 = math.exp %76 : vector<1x8x8xf32>
    %cst_21 = arith.constant dense<0.000000e+00> : vector<1x8xf32>
    %78 = vector.multi_reduction <add>, %77, %cst_21 [2] : vector<1x8x8xf32> to vector<1x8xf32>
    %79 = vector.shape_cast %78 : vector<1x8xf32> to vector<1x8x1xf32>
    %80 = tpu.reciprocal %79 {approx = true} : vector<1x8x1xf32> -> vector<1x8x1xf32>
    %81 = vector.broadcast %80 : vector<1x8x1xf32> to vector<1x8x8xf32>
    %82 = arith.mulf %77, %81 : vector<1x8x8xf32>
    "tpu.trace_start"() <{level = 10 : i32, message = "bqk,bkd->bqd"}> : () -> ()
    %cst_22 = arith.constant dense<0.000000e+00> : vector<1x8x8xf32>
    %83 = tpu.matmul %82, %71, %cst_22 {dimension_numbers = #tpu.dot_dimension_numbers<[2], [1], [1], [2], [0, 0, 0, 1, 1, 2], [0], [0]>} : vector<1x8x8xf32>, vector<1x8x8xf32>, vector<1x8x8xf32> -> vector<1x8x8xf32>
    "tpu.trace_stop"() : () -> ()
    %84 = vector.shape_cast %83 : vector<1x8x8xf32> to vector<8x8xf32>
    %c0_23 = arith.constant 0 : index
    %c24 = arith.constant 24 : index
    %85 = vector.load %arg6[%c0_23, %c24] : memref<8x32xf32, #tpu.memory_space<vmem>>, vector<8x8xf32>
    tpu.vector_store %arg6[%c0_23, %c24], %84 {strides = array<i32>} : memref<8x32xf32, #tpu.memory_space<vmem>>, vector<8x8xf32>,
    %c0_24 = arith.constant 0 : index
    %c0_25 = arith.constant 0 : index
    %86 = vector.load %arg6[%c0_24, %c0_25] : memref<8x32xf32, #tpu.memory_space<vmem>>, vector<8x32xf32>
    %c0_26 = arith.constant 0 : index
    %c0_27 = arith.constant 0 : index
    %87 = vector.load %arg3[%c0_26, %c0_27] : memref<32x128xf32, #tpu.memory_space<vmem>>, vector<32x128xf32>
    %cst_28 = arith.constant dense<0.000000e+00> : vector<8x128xf32>
    %88 = tpu.matmul %86, %87, %cst_28 {dimension_numbers = #tpu.dot_dimension_numbers<[1], [0], [0], [1], [0, 0, 1, 1], [], []>} : vector<8x32xf32>, vector<32x128xf32>, vector<8x128xf32> -> vector<8x128xf32>
    %c0_29 = arith.constant 0 : index
    %c0_30 = arith.constant 0 : index
    %89 = vector.load %arg4[%c0_29, %c0_30] : memref<1x128xf32, #tpu.memory_space<vmem>>, vector<1x128xf32>
    %90 = vector.broadcast %89 : vector<1x128xf32> to vector<8x128xf32>
    %91 = arith.addf %88, %90 : vector<8x128xf32>
    %c0_31 = arith.constant 0 : index
    %c0_32 = arith.constant 0 : index
    %92 = vector.load %arg5[%c0_31, %c0_32] : memref<8x128xf32, #tpu.memory_space<vmem>>, vector<8x128xf32>
    tpu.vector_store %arg5[%c0_31, %c0_32], %91 {strides = array<i32>} : memref<8x128xf32, #tpu.memory_space<vmem>>, vector<8x128xf32>,
    return
  }
  func.func @transform_0(%arg0: i32) -> (i32, i32) {
    %c0_i32 = arith.constant 0 : i32
    %c0_i32_0 = arith.constant 0 : i32
    return %arg0, %c0_i32 : i32, i32
  }
  func.func @transform_1(%arg0: i32) -> (i32, i32) {
    %c0_i32 = arith.constant 0 : i32
    %c0_i32_0 = arith.constant 0 : i32
    %c0_i32_1 = arith.constant 0 : i32
    return %c0_i32, %c0_i32_0 : i32, i32
  }
  func.func @transform_2(%arg0: i32) -> (i32, i32) {
    %c0_i32 = arith.constant 0 : i32
    %c0_i32_0 = arith.constant 0 : i32
    %c0_i32_1 = arith.constant 0 : i32
    return %c0_i32, %c0_i32_0 : i32, i32
  }
  func.func @transform_3(%arg0: i32) -> (i32, i32) {
    %c0_i32 = arith.constant 0 : i32
    %c0_i32_0 = arith.constant 0 : i32
    %c0_i32_1 = arith.constant 0 : i32
    return %c0_i32, %c0_i32_0 : i32, i32
  }
  func.func @transform_4(%arg0: i32) -> (i32, i32) {
    %c0_i32 = arith.constant 0 : i32
    %c0_i32_0 = arith.constant 0 : i32
    return %arg0, %c0_i32 : i32, i32
  }
}

</mosaic_0001>

<bundles_post_ra>
// kernel: tpu_custom_call.1
= control target key start
LH: loop header
LB: loop body
LE: loop exit
PB: predicated region body
PF: predicated region fallthrough
CT: control target
= control target key end

     0   :  { %9 = vsyncpa [#allocation4], 0  ;;  %s1933_s0 = inlined_call_operand.hbm [shape: f32[16,32], index: 0, kind: input, shape index: {}]   ;;  %s1934_s1 = inlined_call_operand.hbm [shape: f32[32,96], index: 1, kind: input, shape index: {}]   ;;  %s1935_s2 = inlined_call_operand.hbm [shape: f32[32,128], index: 2, kind: input, shape index: {}]   ;;  %s1936_s3 = inlined_call_operand.vmem [shape: f32[1,128], index: 3, kind: input, shape index: {}]   ;;  %s1937_s4 = inlined_call_operand.hbm [shape: f32[16,128], index: 4, kind: output, shape index: {}]  }
   0x1   :  { %11 = vsyncpa [#allocation4 + $0x1], 0 }
   0x2   :  { %12 = vsyncpa [#allocation7], 0 }
   0x3   :  { %13 = vsyncpa [#allocation5], 0 }
   0x4   :  { %15 = vsyncpa [#allocation5 + $0x1], 0  ;;  %s1628_s15 = smov 0   ;;  %s1630_s16 = smov 0  }
   0x5   :  { %s1632_s17 = smov 0   ;;  %s1634_s18 = smov 0  }
   0x6 LB: > { %s1649_s19 = sadd.s32 4294967295, %s1578_s18   ;;  %s1189_s20 = sadd.s32 4294967294, %s1578_s18   ;;  %s1578_s18 = sphi %s1634_s18, %s1957_s18   ;;  %s1574_s17 = sphi %s1632_s17, %s1956_s17   ;;  %s1570_s16 = sphi %s1630_s16, %s1955_s16   ;;  %s1566_s15 = sphi %s1628_s15, %s1954_s15  }
   0x7   : > { %p41_p0 = scmp.ne.s32.totalorder %s1570_s16, %s1566_s15  ;;  %p1938_p1 = scmp.eq.s32.totalorder %s1649_s19, 0 }
   0x8   : > { %p134_p3 = scmp.eq.s32.totalorder %s1189_s20, 1  ;;  %p1190_p5 = scmp.ge.s32.totalorder %s1578_s18, 1 }
   0x9   : > { %p1658_p4 = por %p1938_p1, %p41_p0  ;;  %p141_p7 = scmp.lt.s32.totalorder %s1578_s18, 3 }
   0xa   : > { %p1663_p6 = por %p134_p3, %p41_p0  ;;  %s1580_s24 = smov [#allocation6]  }
   0xb   : > { %s1941_s21 = scalar_select %p1658_p4, 1, 0 }
   0xc   : > { %s1942_s22 = scalar_select %p1663_p6, 1, 0 }
   0xd   : > { %p1668_p8 = pnand %p1190_p5, %p141_p7  ;;  %s153_s25 = sshll.u32 %s1580_s24, 4  ;;  %s1672_s25 = int_to_ptr.vmem [resolvable:$true] %s153_s25 }
   0xe   : > { %s1581_s27 = smov [#allocation8]   ;;  %s1422_s5 = scalar_lea.hbm %s1934_s1, 512 }
   0xf   : > { %p1332_p9 = pneg %p1668_p8  ;;  %s166_s28 = sshll.u32 %s1581_s27, 4  ;;  %s1683_s28 = int_to_ptr.vmem [resolvable:$true] %s166_s28 }
  0x10   : > { %p1423_p12 = scmp.ne.s32.totalorder %s1934_s1, %s1422_s5  ;;  %p1429_p5 = scmp.lt.u32.totalorder %s1422_s5, %s1934_s1 }
  0x11   : > { %p1679_p11 = pnand %p1332_p9, %p1938_p1 }
  0x13   : > { %p1424_p13 = pneg %p1679_p11 }
  0x15   : > { %p1425_p0 = pnand %p1424_p13, %p1423_p12 }
  0x17   : > { %p1426_p3 = pneg %p1425_p0 }
  0x19   : > { %p1431_p7 = pnand %p1429_p5, %p1426_p3 }
  0x1b   : > { %1434 = shalt.err (!%p1431_p7)
}
  0x1c   : > { %s1435_s10 = scalar_lea.vmem %s1672_s25, 512  ;;  %p1443_p2 = scmp.lt.s32.totalorder %s1672_s25, %s1672_s25 }
  0x1d   : > { %p1436_p9 = scmp.ne.s32.totalorder %s1672_s25, %s1435_s10  ;;  %p1444_p12 = scmp.lt.s32.totalorder %s1435_s10, %s1435_s10 }
  0x1f   : > { %p1438_p10 = pnand %p1436_p9, %p1424_p13  ;;  %p1445_p0 = por %p1444_p12, %p1443_p2 }
  0x21   : > { %p1439_p1 = pneg %p1438_p10 }
  0x23   : > { %p1446_p6 = pnand %p1445_p0, %p1439_p1 }
  0x25   : > { %1449 = shalt.err (!%p1446_p6)
}
  0x26   : > { %s1582_s11 = smov 128   ;;  %s1583_s12 = smov 8  }
  0x27   : > { %1335 = dma.hbm_to_vmem [thread:$0]  (!%p1679_p11), %s1934_s1, 512, %s1672_s25, [#allocation7], %s1582_s11, %s1582_s11, %s1583_s12  }
  0x28   : > { %s1450_s27 = scalar_lea.hbm %s1935_s2, 512 }
  0x29   : > { %p1451_p2 = scmp.ne.s32.totalorder %s1935_s2, %s1450_s27  ;;  %p1457_p10 = scmp.lt.u32.totalorder %s1450_s27, %s1935_s2 }
  0x2b   : > { %p1453_p1 = pnand %p1451_p2, %p1424_p13 }
  0x2d   : > { %p1454_p6 = pneg %p1453_p1 }
  0x2f   : > { %p1459_p3 = pnand %p1457_p10, %p1454_p6 }
  0x31   : > { %1462 = shalt.err (!%p1459_p3)
}
  0x32   : > { %s1463_s25 = scalar_lea.vmem %s1683_s28, 512  ;;  %p1471_p12 = scmp.lt.s32.totalorder %s1683_s28, %s1683_s28 }
  0x33   : > { %p1464_p5 = scmp.ne.s32.totalorder %s1683_s28, %s1463_s25  ;;  %p1472_p0 = scmp.lt.s32.totalorder %s1463_s25, %s1463_s25 }
  0x35   : > { %p1466_p7 = pnand %p1464_p5, %p1424_p13  ;;  %p1473_p2 = por %p1472_p0, %p1471_p12 }
  0x37   : > { %p1467_p9 = pneg %p1466_p7 }
  0x39   : > { %p1474_p1 = pnand %p1473_p2, %p1467_p9 }
  0x3b   : > { %1477 = shalt.err (!%p1474_p1)
}
  0x3c   : > { %1338 = dma.hbm_to_vmem [thread:$0]  (!%p1679_p11), %s1935_s2, 512, %s1683_s28, [#allocation7], %s1582_s11, %s1582_s11, %s1583_s12  }
  0x3d   : > { %s1738_s9 = sadd.s32 1, %s1578_s18   ;;  %s28_s26 = sadd.s32 1, %s1574_s17 }
  0x3e   : > { %s25_s10 = ssub.s32 %s1578_s18, %s1738_s9  ;;  %p35_p13 = scmp.ne.s32.totalorder %s1574_s17, %s1570_s16 }
  0x3f   : > { %p26_p6 = scmp.eq.s32.totalorder %s25_s10, 0  ;;  %p36_p10 = scmp.eq.s32.totalorder %s1578_s18, 0 }
  0x40   : > { %p1945_p3 = scmp.eq.s32.totalorder %s1649_s19, 1  ;;  %p1349_p7 = scmp.lt.s32.totalorder %s1578_s18, 2 }
  0x41   : > { %s1754_s14 = scalar_select %p26_p6, %s1574_s17, %s28_s26  }
  0x42   : > { %p1748_p5 = por %p1945_p3, %p35_p13  ;;  %p37_p9 = por %p36_p10, %p35_p13 }
  0x43   : > { %s183_s20 = sand.u32 1, %s1574_s17   ;;  %s1195_s28 = sshll.u32 %s1578_s18, 7 }
  0x44   : > { %s1946_s13 = scalar_select %p1748_p5, 1, 0 }
  0x45   : > { %s1194_s24 = sshll.u32 %s183_s20, 3  ;;  %s1761_s27 = scalar_lea.hbm %s1933_s0, %s1195_s28 }
  0x46   : > { %s187_s29 = scalar_lea.vmem [#allocation3], %s1194_s24  ;;  %p1765_p11 = pnand %p1349_p7, %p37_p9 }
  0x47   : > { %s194_s30 = sshll.u32 %s187_s29, 4  ;;  %s184_s6 = scalar_lea.sflag [#allocation4], %s183_s20  ;;  %s1763_s30 = int_to_ptr.vmem [resolvable:$true] %s194_s30 }
  0x48   : > { %s1478_s25 = scalar_lea.hbm %s1761_s27, 128  ;;  %p1480_p0 = pneg %p1765_p11 }
  0x49   : > { %p1479_p12 = scmp.ne.s32.totalorder %s1761_s27, %s1478_s25  ;;  %s1483_s26 = scalar_lea.hbm %s1933_s0, 256 }
  0x4a   : > { %p1484_p13 = scmp.lt.u32.totalorder %s1761_s27, %s1933_s0  ;;  %p1485_p6 = scmp.lt.u32.totalorder %s1483_s26, %s1478_s25 }
  0x4b   : > { %p1481_p2 = pnand %p1480_p0, %p1479_p12  ;;  %p1487_p3 = scmp.lt.u32.totalorder %s1478_s25, %s1761_s27 }
  0x4c   : > { %p1486_p10 = por %p1485_p6, %p1484_p13 }
  0x4d   : > { %p1482_p1 = pneg %p1481_p2 }
  0x4e   : > { %p1488_p7 = por %p1487_p3, %p1486_p10 }
  0x50   : > { %p1489_p9 = pnand %p1488_p7, %p1482_p1 }
  0x52   : > { %1492 = shalt.err (!%p1489_p9)
}
  0x53   : > { %s1493_s20 = scalar_lea.vmem %s1763_s30, 128  ;;  %s1584_s28 = smov [#allocation3]  }
  0x54   : > { %p1494_p12 = scmp.ne.s32.totalorder %s1763_s30, %s1493_s20  ;;  %s1498_s11 = sshll.u32 %s1584_s28, 4  ;;  %s1499_s11 = int_to_ptr.vmem [resolvable:$false] %s1498_s11 }
  0x55   : > { %s1500_s12 = scalar_lea.vmem %s1499_s11, 256  ;;  %p1501_p4 = scmp.lt.s32.totalorder %s1763_s30, %s1499_s11 }
  0x56   : > { %p1496_p2 = pnand %p1494_p12, %p1480_p0  ;;  %p1502_p13 = scmp.lt.s32.totalorder %s1500_s12, %s1493_s20 }
  0x58   : > { %p1497_p5 = pneg %p1496_p2  ;;  %p1503_p6 = por %p1502_p13, %p1501_p4 }
  0x5a   : > { %p1504_p10 = pnand %p1503_p6, %p1497_p5 }
  0x5c   : > { %1507 = shalt.err (!%p1504_p10)
}
  0x5d   : > { %1342 = dma.hbm_to_vmem [thread:$0]  (!%p1765_p11), %s1761_s27, 128, %s1763_s30, %s184_s6  }
  0x5e   : > { %203 = sbr.rel (%p1668_p8) target bundleno = 2112 (0x840), region = 36  ;;  %s1797_s29 = sand.u32 (!%p1668_p8), 1, %s1570_s16  }
  0x5f   : > { %s1197_s25 = sshll.u32 (!%p1668_p8), %s1797_s29, 3  ;;  %s206_s7 = scalar_lea.sflag (!%p1668_p8), [#allocation4], %s1797_s29 }
  0x60   : > { %s209_s8 = scalar_lea.vmem (!%p1668_p8), [#allocation3], %s1197_s25  ;;  %p1948_p4 = scmp.ne.s32.totalorder (!%p1668_p8), %s1941_s21, 0 }
  0x65   : > { %1553 = dma.done.wait (%p1948_p4), %s206_s7, 128  }
  0x66   : > { %1555 = vsyncadd (%p1948_p4), %s206_s7, 4294967168  ;;  %p1949_p5 = scmp.eq.s32.totalorder %s1649_s19, 0 }
  0x68   : > { %1557 = dma.done.wait (%p1949_p5), [#allocation7], 1024   ;;  %p1950_p8 = pmov %p1949_p5 }
  0x69   : > { %v1585_v0 = vmov 0.0|0.0   ;;  %vm1586_vm0 = vmmov 0   ;;  %v1587_v1 = vmov 0.0   ;;  %v243_v2 = vld [vmem:[#allocation6] sm:$0xff]  ;;  %v244_v3 = vld [vmem:[#allocation6 + $0x8] sm:$0xff]  ;;  %v245_v4 = vld [vmem:[#allocation6 + $0x10] sm:$0xff] }
  0x6a   : > { %1559 = vsyncadd (%p1950_p8), [#allocation7], 4294966272  ;;  %1308 = vmatprep.subr.bf16.mxu0 %v1585_v0  ;;  %1254 = vmatprep.mubr.msk.f32.mxu0 %vm1586_vm0, %v1587_v1  ;;  %v1309_v5 = vpack.c.bf16 %v244_v3, %v243_v2  ;;  %v246_v6 = vld [vmem:[#allocation6 + $0x18] sm:$0xff]  ;;  %vm247_vm1 = vcmask 261120   ;;  %s1588_s21 = smov 64   ;;  %s1589_s23 = smov 96  }
  0x6b   : > { %1257 = vmatprep.subr.mxu1 %v1587_v1  ;;  %1259 = vmatprep.mubr.msk.f32.mxu1 %vm1586_vm0, %v1587_v1  ;;  %v1312_v7 = vpack.c.bf16 %v246_v6, %v245_v4  ;;  %v242_v8 = vld [vmem:[%s209_s8] sm:$0xff]  ;;  %s1590_s27 = smov 88   ;;  %s1591_s30 = smov 120   ;;  %vm324_vm2 = vcmask 64512   ;;  %v1001_v6 = vld [vmem:[#allocation8] sm:$0xff]  ;;  %vm656_vm3 = vcmask 130112  }
  0x6c   : > { %1310 = vmatpush3.bf16.msra.mxu0 %v1309_v5  ;;  %s1592_s5 = smov 80   ;;  %s1593_s6 = smov 72   ;;  %vm827_vm4 = vcmask 195712   ;;  %vm998_vm5 = vcmask 261312  }
  0x6d   : > { %1311 = vmatprep.subr.bf16.mxu0 %v1585_v0  ;;  %s1594_s26 = smov 112   ;;  %s1595_s10 = smov 104  }
  0x6e   : > { %s1596_s24 = smov 56   ;;  %s1597_s20 = smov 48  }
  0x6f   : > { %s1598_s28 = smov 40   ;;  %s1599_s11 = smov 8  }
  0x70   : > { %1313 = vmatpush3.bf16.msra.mxu0 %v1312_v7  ;;  %v1002_v7 = vld [vmem:[#allocation8 + $0x8] sm:$0xff]  ;;  %s1600_s12 = smov 16   ;;  %s1601_s7 = smov 24  }
  0x71   : > { %1277 = vmatprep.subr.mxu0 %v1587_v1  ;;  %p1951_p0 = scmp.ne.s32.totalorder %s1946_s13, 0 }
  0x73   : > { %1255 = vmatmul.mubr.msk.f32.vlgmr.msra.gmra.mrb[0].mxu0 %vm247_vm1, %v242_v8  ;;  %v1315_v8 = vpack.c.bf16 %v1002_v7, %v1001_v6 }
  0x74   : > { %1279 = vmatprep.mubr.msk.f32.mxu0 %vm1586_vm0, %v1587_v1 }
 0x146   : > { %v1822_v9 = vpop.f32.mrb[0].mxu0 }
 0x147   : > { %410 = vrot.lane.b32.xlu1 %v1822_v9, %s1588_s21  ;;  %322 = vrot.lane.b32.xlu0 %v1822_v9, %s1589_s23  ;;  %v1256_v10 = vpop.f32.mrb[1].mxu0  ;;  %s1217_s23 = sshll.u32 %s1649_s19, 7  ;;  %s1602_s19 = smov [#allocation9]  }
 0x148   : > { %v1004_v10 = vld [vmem:[#allocation8 + $0x18] sm:$0xff] }
 0x14b   : > { %489 = vrot.lane.b32.xlu1 %v1822_v9, %s1590_s27  ;;  %s241_s27 = scalar_lea.vmem [#allocation9], %s1197_s25  ;;  %s1512_s25 = sshll.u32 %s1602_s19, 4  ;;  %s1513_s25 = int_to_ptr.vmem [resolvable:$false] %s1512_s25 }
 0x14f   : > { %487 = vrot.lane.b32.xlu1 %v1822_v9, %s1591_s30  ;;  %s1100_s30 = sshll.u32 %s241_s27, 4  ;;  %s1891_s30 = int_to_ptr.vmem [resolvable:$true] %s1100_s30 }
 0x150   : > { %p1515_p7 = scmp.lt.s32.totalorder %s1891_s30, %s1513_s25 }
 0x153   : > { %660 = vrot.lane.b32.xlu1 %v1822_v9, %s1592_s5 }
 0x1b9   : > { %v411_v11 = vpop.permute.xlu1 %410  ;;  %v323_v12 = vpop.permute.xlu0 %322 }
 0x1ba   : > { %1258 = vmatpush3.xpose.msk.msra.mxu1 %vm324_vm2, %v323_v12 }
 0x1bb   : > { %1262 = vmatprep.subr.mxu1 %v1587_v1 }
 0x1bd   : > { %v490_v13 = vpop.permute.xlu1 %489  ;;  %1260 = vmatmul.mubr.msk.f32.vlgmr.msra.gmra.mrb[0].mxu1 %vm324_vm2, %v1822_v9 }
 0x1be   : > { %1263 = vmatpush3.msra.mxu1 %v411_v11  ;;  %1264 = vmatprep.mubr.msk.f32.mxu1 %vm1586_vm0, %v1587_v1 }
 0x1bf   : > { %1267 = vmatprep.subr.mxu1 %v1587_v1 }
 0x1c1   : > { %v488_v14 = vpop.permute.xlu1 %487 }
 0x1c5   : > { %v661_v15 = vpop.permute.xlu1 %660 }
 0x1c6   : > { %1278 = vmatpush3.xpose.msk.msra.mxu0 %vm324_vm2, %v661_v15 }
 0x1c7   : > { %1287 = vmatprep.subr.mxu0 %v1587_v1 }
 0x290   : > { %v395_v16 = vpop.f32.mrb[0].mxu1 }
 0x291   : > { %v1261_v17 = vpop.f32.mrb[1].mxu1  ;;  %v399_v18 = vsel %vm324_vm2, %v395_v16, -inf }
 0x292   : > { %400 = vmax.xlane.f32.xlu0 %v399_v18 }
 0x2a8   : > { %831 = vrot.lane.b32.xlu0 %v1822_v9, %s1593_s6 }
 0x31f   : > { %v401_v19 = vpop.xlane.xlu0 %400 }
 0x320   : > { %v402_v20 = vsub.f32 %v395_v16, %v401_v19 }
 0x322   : > { %v403_v21 = vmul.f32 1.442695, %v402_v20  ;;  %v1214_v20 = vld [vmem:[%s1936_s3] ss:$0 sm:$0xff] }
 0x323   : > { %v832_v26 = vpop.permute.xlu0 %831 }
 0x324   : > { %1406 = vpow2.f32 %v403_v21 }
 0x32e   : > { %v1407_v22 = vpop.eup %1406 }
 0x32f   : > { %v405_v23 = vsel %vm324_vm2, %v1407_v22, 0.0 }
 0x330   : > { %406 = vadd.xlane.f32.xlu1 %v405_v23 }
 0x341   : > { %658 = vrot.lane.b32.xlu1 %v1822_v9, %s1594_s26  ;;  %s1889_s26 = scalar_lea.hbm %s1937_s4, %s1217_s23 }
 0x345   : > { %829 = vrot.lane.b32.xlu1 %v1822_v9, %s1595_s10  ;;  %s1087_s10 = scalar_lea.sflag [#allocation5], %s1797_s29 }
 0x3bd   : > { %v407_v24 = vpop.xlane.xlu1 %406 }
 0x3be   : > { %1408 = vrcp.f32 %v407_v24 }
 0x3c1   : > { %v659_v25 = vpop.permute.xlu1 %658 }
 0x3c2   : > { %1280 = vmatmul.mubr.msk.f32.vlgmr.msra.gmra.mrb[2].mxu0 %vm324_vm2, %v659_v25 }
 0x3c3   : > { %1288 = vmatpush3.xpose.msk.msra.mxu0 %vm324_vm2, %v832_v26  ;;  %1289 = vmatprep.mubr.msk.f32.mxu0 %vm1586_vm0, %v1587_v1 }
 0x3c4   : > { %1314 = vmatprep.subr.bf16.mxu0 %v1585_v0 }
 0x3c5   : > { %v830_v27 = vpop.permute.xlu1 %829 }
 0x3c6   : > { %1290 = vmatmul.mubr.msk.f32.vlgmr.msra.gmra.mrb[4].mxu0 %vm324_vm2, %v830_v27 }
 0x3c7   : > { %1305 = vmatprep.mubr.msk.f32.mxu0 %vm1586_vm0, %v1587_v1  ;;  %1316 = vmatpush3.bf16.msra.mxu0 %v1315_v8 }
 0x3c8   : > { %v1409_v28 = vpop.eup %1408  ;;  %1317 = vmatprep.subr.bf16.mxu0 %v1585_v0 }
 0x3c9   : > { %v409_v29 = vmul.f32 %v1409_v28, %v1407_v22 }
 0x3cb   : > { %1265 = vmatmul.mubr.msk.f32.vlgmr.msra.gmra.mrb[2].mxu1 %vm324_vm2, %v409_v29 }
 0x3cc   : > { %1268 = vmatpush3.xpose.msk.msra.mxu1 %vm324_vm2, %v490_v13  ;;  %1269 = vmatprep.mubr.msk.f32.mxu1 %vm1586_vm0, %v1587_v1 }
 0x3cd   : > { %1272 = vmatprep.subr.mxu1 %v1587_v1 }
 0x3cf   : > { %1270 = vmatmul.mubr.msk.f32.vlgmr.msra.gmra.mrb[4].mxu1 %vm324_vm2, %v488_v14 }
 0x3d0   : > { %1274 = vmatprep.mubr.msk.f32.mxu1 %vm1586_vm0, %v1587_v1 }
 0x495   : > { %v732_v30 = vpop.f32.mrb[2].mxu0 }
 0x496   : > { %v1281_v31 = vpop.f32.mrb[3].mxu0  ;;  %v736_v32 = vsel %vm324_vm2, %v732_v30, -inf }
 0x497   : > { %737 = vmax.xlane.f32.xlu0 %v736_v32 }
 0x499   : > { %v903_v33 = vpop.f32.mrb[4].mxu0 }
 0x49a   : > { %v1291_v34 = vpop.f32.mrb[5].mxu0  ;;  %v907_v40 = vsel %vm324_vm2, %v903_v33, -inf }
 0x49e   : > { %v482_v35 = vpop.f32.mrb[2].mxu1 }
 0x49f   : > { %486 = vst.msk [vmem:[#allocation2] sm:$0xff] %vm324_vm2, %v482_v35  ;;  %v1266_v36 = vpop.f32.mrb[3].mxu1 }
 0x4a2   : > { %v561_v37 = vpop.f32.mrb[4].mxu1 }
 0x4a3   : > { %v1271_v38 = vpop.f32.mrb[5].mxu1  ;;  %v565_v39 = vsel %vm324_vm2, %v561_v37, -inf }
 0x4a4   : > { %566 = vmax.xlane.f32.xlu1 %v565_v39 }
 0x4a8   : > { %908 = vmax.xlane.f32.xlu1 %v907_v40 }
 0x524   : > { %v738_v41 = vpop.xlane.xlu0 %737 }
 0x525   : > { %v739_v42 = vsub.f32 %v732_v30, %v738_v41 }
 0x527   : > { %v740_v43 = vmul.f32 1.442695, %v739_v42 }
 0x529   : > { %1410 = vpow2.f32 %v740_v43 }
 0x531   : > { %v567_v44 = vpop.xlane.xlu1 %566 }
 0x532   : > { %v568_v52 = vsub.f32 %v561_v37, %v567_v44 }
 0x533   : > { %v1411_v45 = vpop.eup %1410 }
 0x534   : > { %v742_v46 = vsel %vm324_vm2, %v1411_v45, 0.0  ;;  %v569_v53 = vmul.f32 1.442695, %v568_v52 }
 0x535   : > { %743 = vadd.xlane.f32.xlu1 %v742_v46  ;;  %v909_v47 = vpop.xlane.xlu1 %908 }
 0x536   : > { %v910_v48 = vsub.f32 %v903_v33, %v909_v47 }
 0x538   : > { %v911_v49 = vmul.f32 1.442695, %v910_v48 }
 0x53a   : > { %1412 = vpow2.f32 %v911_v49 }
 0x53b   : > { %1414 = vpow2.f32 %v569_v53 }
 0x544   : > { %v1413_v50 = vpop.eup %1412 }
 0x545   : > { %v913_v51 = vsel %vm324_vm2, %v1413_v50, 0.0  ;;  %v1415_v54 = vpop.eup %1414 }
 0x546   : > { %576 = vrot.lane.b32.xlu1 %v1822_v9, %s1596_s24  ;;  %914 = vadd.xlane.f32.xlu0 %v913_v51  ;;  %v571_v55 = vsel %vm324_vm2, %v1415_v54, 0.0  ;;  %s1508_s24 = scalar_lea.vmem %s1891_s30, 128 }
 0x547   : > { %p1509_p11 = scmp.ne.s32.totalorder %s1891_s30, %s1508_s24 }
 0x549   : > { %p1510_p1 = pnand %p1509_p11, %p1951_p0 }
 0x54b   : > { %p1511_p3 = pneg %p1510_p1 }
 0x55c   : > { %747 = vrot.lane.b32.xlu0 %v1822_v9, %s1597_s20  ;;  %s1514_s20 = scalar_lea.vmem %s1513_s25, 256 }
 0x55d   : > { %p1516_p9 = scmp.lt.s32.totalorder %s1514_s20, %s1508_s24 }
 0x55f   : > { %p1517_p12 = por %p1516_p9, %p1515_p7 }
 0x561   : > { %p1518_p2 = pnand %p1517_p12, %p1511_p3 }
 0x56a   : > { %572 = vadd.xlane.f32.xlu1 %v571_v55 }
 0x57b   : > { %918 = vrot.lane.b32.xlu1 %v1822_v9, %s1598_s28  ;;  %v1003_v9 = vld [vmem:[#allocation8 + $0x10] sm:$0xff] }
 0x57c   : > { %v1318_v11 = vpack.c.bf16 %v1004_v10, %v1003_v9 }
 0x57e   : > { %1319 = vmatpush3.bf16.msra.mxu0 %v1318_v11 }
 0x5c2   : > { %v744_v56 = vpop.xlane.xlu1 %743 }
 0x5c6   : > { %v577_v57 = vpop.permute.xlu1 %576 }
 0x5c7   : > { %1273 = vmatpush3.msra.mxu1 %v577_v57 }
 0x5c8   : > { %1282 = vmatprep.subr.mxu1 %v1587_v1 }
 0x5d3   : > { %v915_v59 = vpop.xlane.xlu0 %914 }
 0x5d7   : > { %v748_v63 = vpop.permute.xlu0 %747 }
 0x5f7   : > { %v573_v58 = vpop.xlane.xlu1 %572 }
 0x5f8   : > { %1416 = vrcp.f32 %v573_v58 }
 0x5f9   : > { %1418 = vrcp.f32 %v744_v56 }
 0x5fa   : > { %1420 = vrcp.f32 %v915_v59 }
 0x5fb   : > { %v919_v4 = vpop.permute.xlu1 %918 }
 0x602   : > { %v1417_v60 = vpop.eup %1416 }
 0x603   : > { %v575_v61 = vmul.f32 %v1417_v60, %v1415_v54  ;;  %v1419_v62 = vpop.eup %1418 }
 0x604   : > { %v746_v2 = vmul.f32 %v1419_v62, %v1411_v45  ;;  %v1421_v3 = vpop.eup %1420 }
 0x605   : > { %1275 = vmatmul.mubr.msk.f32.vlgmr.msra.gmra.mrb[6].mxu1 %vm324_vm2, %v575_v61  ;;  %v917_v5 = vmul.f32 %v1421_v3, %v1413_v50 }
 0x606   : > { %1283 = vmatpush3.msra.mxu1 %v748_v63  ;;  %1284 = vmatprep.mubr.msk.f32.mxu1 %vm1586_vm0, %v1587_v1 }
 0x607   : > { %1292 = vmatprep.subr.mxu1 %v1587_v1 }
 0x609   : > { %1285 = vmatmul.mubr.msk.f32.vlgmr.msra.gmra.mrb[8].mxu1 %vm324_vm2, %v746_v2 }
 0x60a   : > { %1293 = vmatpush3.msra.mxu1 %v919_v4  ;;  %1294 = vmatprep.mubr.msk.f32.mxu1 %vm1586_vm0, %v1587_v1 }
 0x60d   : > { %1295 = vmatmul.mubr.msk.f32.vlgmr.msra.gmra.mrb[10].mxu1 %vm324_vm2, %v917_v5 }
 0x6d8   : > { %v648_v12 = vpop.f32.mrb[6].mxu1 }
 0x6d9   : > { %653 = vrot.lane.b32.xlu1 %v648_v12, %s1599_s11  ;;  %v1276_v13 = vpop.f32.mrb[7].mxu1 }
 0x6dc   : > { %v819_v14 = vpop.f32.mrb[8].mxu1 }
 0x6dd   : > { %824 = vrot.lane.b32.xlu0 %v819_v14, %s1600_s12  ;;  %v1286_v1 = vpop.f32.mrb[9].mxu1 }
 0x6e0   : > { %v990_v15 = vpop.f32.mrb[10].mxu1 }
 0x6e1   : > { %995 = vrot.lane.b32.xlu1 %v990_v15, %s1601_s7  ;;  %v1296_v16 = vpop.f32.mrb[11].mxu1 }
 0x74b   : > { %v654_v17 = vpop.permute.xlu1 %653 }
 0x74c   : > { %657 = vst.msk [vmem:[#allocation2] sm:$0xff] %vm656_vm3, %v654_v17 }
 0x74f   : > { %v825_v0 = vpop.permute.xlu0 %824 }
 0x750   : > { %828 = vst.msk [vmem:[#allocation2] sm:$0xff] %vm827_vm4, %v825_v0 }
 0x753   : > { %v996_v18 = vpop.permute.xlu1 %995 }
 0x754   : > { %999 = vst.msk [vmem:[#allocation2] sm:$0xff] %vm998_vm5, %v996_v18 }
 0x75b   : > { %v1000_v19 = vld [vmem:[#allocation2] sm:$0xff] }
 0x75c   : > { %1306 = vmatmul.mubr.msk.f32.vlgmr.msra.gmra.mrb[6].mxu0 %vm247_vm1, %v1000_v19 }
 0x82f   : > { %v1081_v21 = vpop.f32.mrb[6].mxu0 }
 0x830   : > { %v1082_v22 = vadd.f32 %v1214_v20, %v1081_v21  ;;  %v1307_v23 = vpop.f32.mrb[7].mxu0 }
 0x832   : > { %1085 = vst [vmem:[%s241_s27] sm:$0xff] %v1082_v22 }
 0x833   : > { %1521 = shalt.err (!%p1518_p2)
}
 0x834   : > { %s1522_s29 = scalar_lea.hbm %s1889_s26, 128  ;;  %s1526_s12 = scalar_lea.hbm %s1937_s4, 256 }
 0x835   : > { %p1523_p13 = scmp.ne.s32.totalorder %s1889_s26, %s1522_s29  ;;  %p1527_p4 = scmp.lt.u32.totalorder %s1889_s26, %s1937_s4 }
 0x836   : > { %p1528_p5 = scmp.lt.u32.totalorder %s1526_s12, %s1522_s29  ;;  %p1530_p11 = scmp.lt.u32.totalorder %s1522_s29, %s1889_s26 }
 0x837   : > { %p1524_p6 = pnand %p1523_p13, %p1951_p0 }
 0x838   : > { %p1529_p8 = por %p1528_p5, %p1527_p4 }
 0x839   : > { %p1525_p10 = pneg %p1524_p6 }
 0x83a   : > { %p1531_p1 = por %p1530_p11, %p1529_p8 }
 0x83c   : > { %p1532_p3 = pnand %p1531_p1, %p1525_p10 }
 0x83e   : > { %1535 = shalt.err (!%p1532_p3)
}
 0x83f   : > { %1330 = dma.vmem_to_hbm [thread:$0]  (%p1951_p0), %s1891_s30, 128, %s1889_s26, %s1087_s10  }
 0x840 PF: > { %s1112_s21 = sand.u32 1, %s1566_s15   ;;  %p1952_p7 = scmp.ne.s32.totalorder %s1942_s22, 0 }
 0x841   : > { %p1953_p9 = scmp.ge.s32.totalorder %s1578_s18, 2  ;;  %s1113_s23 = scalar_lea.sflag [#allocation5], %s1112_s21 }
 0x843   : > { %p1344_p12 = pnand %p1953_p9, %p1952_p7 }
 0x845   : > { %1561 = dma.done.wait (!%p1344_p12), %s1113_s23, 128  }
 0x846   : > { %1563 = vsyncadd (!%p1344_p12), %s1113_s23, 4294967168  ;;  %p18_p2 = scmp.ge.s32.totalorder %s1738_s9, 4   ;;  %s1954_s15 = smov %s1570_s16 }
 0x847   : > { %s1955_s16 = smov %s1574_s17  ;;  %s1956_s17 = smov %s1754_s14 }
 0x848   : > { %s1957_s18 = smov %s1738_s9  ;;  %20 = sbr.rel (!%p18_p2) target bundleno = 6 (0x6), region = 89 }
 0x84f   :  { %1118 = vsyncpa [#allocation4], 1 }
 0x850   :  { %1120 = vsyncpa [#allocation4 + $0x1], 1 }
 0x851   :  { %1121 = vsyncpa [#allocation7], 1 }
 0x852   :  { %1122 = vsyncpa [#allocation5], 1 }
 0x853   :  { %1124 = vsyncpa [#allocation5 + $0x1], 1 }

</bundles_post_ra>
